<compile_context>
chip_gen: v5e
topology: v5e:2x2
jax: 0.10.0
libtpu: 0.0.40
codegen_flags: <defaults>
</compile_context>

<pallas_src>
import functools

import jax
import jax.numpy as jnp
from jax import lax
from jax.experimental import pallas as pl
from jax.experimental.pallas import tpu as pltpu


def _num_tensorcores() -> int:
    """Best-effort TensorCores-per-device. Only affects how many 'parallel'
    halves the CE reduction is split into; correctness never depends on it."""
    try:
        info = pltpu.get_tpu_info()
        for attr in ("num_cores", "core_count", "tensorcore_count",
                     "num_tensorcores", "cores_per_chip"):
            v = getattr(info, attr, None)
            if v:
                return max(1, int(v))
    except Exception:
        pass
    try:
        kind = jax.devices()[0].device_kind.lower()
    except Exception:
        return 1
    if any(s in kind for s in ("lite", "v5e", "v6e", "v6")):
        return 1          # single TensorCore per chip (v5e / v6e)
    if any(s in kind for s in ("v4", "v5p", "v7", "7x", "tpu7")):
        return 2          # megacore / dual-TC devices (v4 / v5p / v7x)
    return 1


# ---------------------------------------------------------------------------
# Kernel 1: mean cross-entropy over N samples (lane-dense (C, N) layout)
# ---------------------------------------------------------------------------
def _ce_kernel(logits_ref, labels_ref, out_ref, acc_ref, *,
               n_valid, tile_n, tiles_per_half):
    half = pl.program_id(0)          # "parallel" axis (one per TC on dual-TC)
    j = pl.program_id(1)             # "arbitrary" reduction over N tiles

    @pl.when(j == 0)
    def _():
        acc_ref[...] = jnp.zeros_like(acc_ref)

    logits = logits_ref[...].astype(jnp.float32)    # (C, TILE_N)  f32 compute
    labels = labels_ref[...]                        # (1, TILE_N)  int32

    # numerically stable log-sum-exp over the class (sublane) axis
    m = jnp.max(logits, axis=0, keepdims=True)                        # (1, T)
    lse = jnp.log(jnp.sum(jnp.exp(logits - m), axis=0, keepdims=True)) + m

    # gather the label logit via a one-hot select over classes (no gather op)
    cls = lax.broadcasted_iota(jnp.int32, logits.shape, 0)            # (C, T)
    picked = jnp.sum(jnp.where(cls == labels, logits, 0.0),
                     axis=0, keepdims=True)                           # (1, T)

    # mask out-of-range columns (global column index >= N); the index_map is
    # clamped, so any garbage data loaded for OOB blocks is discarded here.
    col = (lax.broadcasted_iota(jnp.int32, (1, tile_n), 1)
           + (half * tiles_per_half + j) * tile_n)
    acc_ref[...] += jnp.where(col < n_valid, lse - picked, 0.0)       # VPU only

    @pl.when(j == pl.num_programs(1) - 1)
    def _():
        # single cross-lane reduce per half; lane-dense (8,128) output tile,
        # wrapper reads element [8*half, 0]
        out_ref[...] = jnp.full(out_ref.shape, jnp.sum(acc_ref[...]),
                                dtype=jnp.float32)


def cross_entropy_mean(prediction, annotation, tile_n=None):
    n, c = prediction.shape
    itemsize = jnp.dtype(prediction.dtype).itemsize

    # lane-dense layout: classes on sublanes, samples on the 128-lane axis
    logits_t = jnp.transpose(prediction)                     # (C, N), native dtype
    labels = annotation.astype(jnp.int32).reshape(1, n)      # (1, N)

    # Tile sizing by byte budget: ~2 MiB of logits per block (multiple of 128
    # lanes).  Working set ~= 2 * block (double-buffer) + ~4 f32-sized temps,
    # comfortably under v7x's 64 MiB physical VMEM.
    if tile_n is None:
        tile_n = (2 * 1024 * 1024) // (max(c, 8) * itemsize)
    tile_n = max(128, (tile_n // 128) * 128)
    tile_n = min(tile_n, max(128, pl.cdiv(n, 128) * 128))

    tiles_total = pl.cdiv(n, tile_n)
    n_halves = max(1, min(_num_tensorcores(), tiles_total))
    tiles_per_half = pl.cdiv(tiles_total, n_halves)

    # explicit VMEM budget: double-buffered inputs + f32 temporaries + acc
    block_bytes = c * tile_n * itemsize + tile_n * 4
    temp_bytes = 4 * c * tile_n * 4
    est_bytes = 2 * block_bytes + temp_bytes + 2 * tile_n * 4 + 4 * 8 * 128 * 4
    vmem_limit = int(min(56 << 20, max(32 << 20, 2 * est_bytes)))

    # clamp block index so no DMA starts fully outside the (unpadded) array;
    # the in-kernel column mask discards whatever such a block loads.
    last_block = tiles_total - 1

    def _block_col(h, j):
        return jnp.minimum(h * tiles_per_half + j, last_block)

    kernel = functools.partial(_ce_kernel, n_valid=n, tile_n=tile_n,
                               tiles_per_half=tiles_per_half)

    partial = pl.pallas_call(
        kernel,
        out_shape=jax.ShapeDtypeStruct((n_halves * 8, 128), jnp.float32),
        grid_spec=pltpu.PrefetchScalarGridSpec(
            num_scalar_prefetch=0,
            grid=(n_halves, tiles_per_half),
            in_specs=[
                pl.BlockSpec((c, tile_n), lambda h, j: (0, _block_col(h, j))),
                pl.BlockSpec((1, tile_n), lambda h, j: (0, _block_col(h, j))),
            ],
            out_specs=pl.BlockSpec((8, 128), lambda h, j: (h, 0)),
            scratch_shapes=[pltpu.VMEM((1, tile_n), jnp.float32)],
        ),
        compiler_params=pltpu.CompilerParams(
            dimension_semantics=("parallel", "arbitrary"),
            vmem_limit_bytes=vmem_limit),
    )(logits_t, labels)

    # combine per-half partial sums, divide by N exactly once
    return jnp.sum(partial[0::8, 0]) / jnp.float32(n)


# ---------------------------------------------------------------------------
# Kernel 2: feature_transform_reguliarzer
#   mean_b || T_b @ T_b^T - I ||_F   (whole batch per grid step when it fits)
# ---------------------------------------------------------------------------
def _ftr_kernel(trans_ref, out_ref, acc_ref, *, b_valid, bt, n_steps):
    i = pl.program_id(0)

    t = trans_ref[...].astype(jnp.float32)                    # (bt, d, d)
    d = t.shape[-1]

    # batched T @ T^T on the MXU: contract the last axes of both operands,
    # no explicit transpose/XLU copy.
    gram = jnp.einsum("bij,bkj->bik", t, t,
                      preferred_element_type=jnp.float32)     # (bt, d, d)

    eye = (lax.broadcasted_iota(jnp.int32, (d, d), 0)
           == lax.broadcasted_iota(jnp.int32, (d, d), 1)).astype(jnp.float32)
    diff = gram - eye[None, :, :]

    if n_steps * bt != b_valid:
        # some block has rows past the real batch -> mask them (static branch)
        bidx = lax.broadcasted_iota(jnp.int32, (bt, d, d), 0) + i * bt
        diff = jnp.where(bidx < b_valid, diff, 0.0)

    sq = jnp.sum(diff * diff, axis=-1)                        # (bt, d)
    fro = jnp.sqrt(jnp.sum(sq, axis=-1, keepdims=True))       # (bt, 1)
    step_sum = jnp.sum(fro)

    if n_steps == 1:
        out_ref[0, 0] = step_sum / jnp.float32(b_valid)
    else:
        @pl.when(i == 0)
        def _():
            acc_ref[0] = jnp.float32(0.0)

        acc_ref[0] += step_sum

        @pl.when(i == n_steps - 1)
        def _():
            out_ref[0, 0] = acc_ref[0] / jnp.float32(b_valid)


def feature_transform_regularizer(trans_feats):
    b, d, _ = trans_feats.shape
    # whole batch in one grid step whenever the (bt, d, d) f32 slab fits a
    # modest ~4 MiB budget (d=64 -> up to 256 matrices per step)
    bt_cap = max(1, (4 * 1024 * 1024) // (d * d * 4))
    bt = min(b, bt_cap)
    n_steps = pl.cdiv(b, bt)

    kernel = functools.partial(_ftr_kernel, b_valid=b, bt=bt, n_steps=n_steps)

    out = pl.pallas_call(
        kernel,
        out_shape=jax.ShapeDtypeStruct((1, 1), jnp.float32),
        grid_spec=pltpu.PrefetchScalarGridSpec(
            num_scalar_prefetch=0,
            grid=(n_steps,),
            in_specs=[pl.BlockSpec((bt, d, d), lambda i: (i, 0, 0))],
            out_specs=pl.BlockSpec((1, 1), lambda i: (0, 0)),
            scratch_shapes=[pltpu.SMEM((1,), jnp.float32)],
        ),
        compiler_params=pltpu.CompilerParams(
            dimension_semantics=("arbitrary",)),
    )(trans_feats)
    return out[0, 0]


# ---------------------------------------------------------------------------
# Module-equivalent wrapper
# ---------------------------------------------------------------------------
class CrossEntropyLoss:
    def __init__(self, mat_diff_loss_scale=0.001):
        # NOTE: the PyTorch forward never uses this scale; kept for parity.
        self.mat_diff_loss_scale = mat_diff_loss_scale

    def __call__(self, prediction, annotation, trans_feats=None):
        loss = cross_entropy_mean(prediction, annotation)
        if trans_feats is not None:
            loss = loss + feature_transform_regularizer(trans_feats)
        return loss


if __name__ == "__main__":
    key = jax.random.PRNGKey(0)
    k1, k2, k3 = jax.random.split(key, 3)

    N, C = 500, 16         # N samples (e.g. batch * points), C classes
    B, D = 2, 64           # feature-transform matrices

    prediction = jax.random.normal(k1, (N, C), dtype=jnp.float32)
    annotation = jax.random.randint(k2, (N,), 0, C, dtype=jnp.int32)
    trans_feats = jax.random.normal(k3, (B, D, D), dtype=jnp.float32) * 0.1

    loss_fn = CrossEntropyLoss()
    loss = loss_fn(prediction, annotation, trans_feats)
    jax.block_until_ready(loss)

    # plain-JAX reference
    logp = jax.nn.log_softmax(prediction, axis=-1)
    ce_ref = -jnp.mean(logp[jnp.arange(N), annotation])
    eye = jnp.eye(D)[None]
    ftr_ref = jnp.mean(
        jnp.sqrt(jnp.sum(
            (jnp.einsum("bij,bkj->bik", trans_feats, trans_feats) - eye) ** 2,
            axis=(1, 2))))
    ref = ce_ref + ftr_ref
    assert jnp.allclose(loss, ref, rtol=1e-4, atol=1e-4), (loss, ref)

    # also exercise the multi-tile + unpadded tail-mask (+ half-split, on
    # dual-TC devices) path of the CE kernel
    ce_tiled = cross_entropy_mean(prediction, annotation, tile_n=128)
    jax.block_until_ready(ce_tiled)
    assert jnp.allclose(ce_tiled, ce_ref, rtol=1e-4, atol=1e-4), (ce_tiled, ce_ref)

    print("KERNEL_OK")
</pallas_src>

<mosaic_0001>
module attributes {stable_mosaic.version = 11 : i64} {
  func.func @_ce_kernel(%arg0: i32, %arg1: i32, %arg2: memref<16x512xf32, #tpu.memory_space<vmem>>, %arg3: memref<1x512xi32, #tpu.memory_space<vmem>>, %arg4: memref<8x128xf32, #tpu.memory_space<vmem>>, %arg5: memref<1x512xf32, #tpu.memory_space<vmem>>) attributes {dimension_semantics = [#tpu.dimension_semantics<parallel>, #tpu.dimension_semantics<arbitrary>], iteration_bounds = array<i64: 1, 1>, scalar_prefetch = 0 : i64, scratch_operands = 1 : i64, tpu.core_type = #tpu.core_type<tc>, window_params = [{transform_indices = @transform_0, window_bounds = array<i64: 16, 512>}, {transform_indices = @transform_1, window_bounds = array<i64: 1, 512>}, {transform_indices = @transform_2, window_bounds = array<i64: 8, 128>}]} {
    %c0_i32 = arith.constant 0 : i32
    %0 = arith.cmpi eq, %arg1, %c0_i32 : i32
    %1 = arith.extui %0 : i1 to i32
    %c0_i32_0 = arith.constant 0 : i32
    %2 = arith.cmpi ne, %1, %c0_i32_0 : i32
    scf.if %2 {
      %cst_14 = arith.constant 0.000000e+00 : f32
      %38 = vector.broadcast %cst_14 : f32 to vector<1x512xf32>
      %c0_15 = arith.constant 0 : index
      %c0_16 = arith.constant 0 : index
      %39 = vector.load %arg5[%c0_15, %c0_16] : memref<1x512xf32, #tpu.memory_space<vmem>>, vector<1x512xf32>
      tpu.vector_store %arg5[%c0_15, %c0_16], %38 {strides = array<i32>} : memref<1x512xf32, #tpu.memory_space<vmem>>, vector<1x512xf32>,
    } else {
    }
    %c0 = arith.constant 0 : index
    %c0_1 = arith.constant 0 : index
    %3 = vector.load %arg2[%c0, %c0_1] : memref<16x512xf32, #tpu.memory_space<vmem>>, vector<16x512xf32>
    %c0_2 = arith.constant 0 : index
    %c0_3 = arith.constant 0 : index
    %4 = vector.load %arg3[%c0_2, %c0_3] : memref<1x512xi32, #tpu.memory_space<vmem>>, vector<1x512xi32>
    %cst = arith.constant dense<0xFF800000> : vector<512xf32>
    %5 = vector.multi_reduction <maximumf>, %3, %cst [0] : vector<16x512xf32> to vector<512xf32>
    %6 = vector.shape_cast %5 : vector<512xf32> to vector<1x512xf32>
    %7 = vector.broadcast %6 : vector<1x512xf32> to vector<16x512xf32>
    %8 = arith.subf %3, %7 : vector<16x512xf32>
    %9 = math.exp %8 : vector<16x512xf32>
    %cst_4 = arith.constant dense<0.000000e+00> : vector<512xf32>
    %10 = vector.multi_reduction <add>, %9, %cst_4 [0] : vector<16x512xf32> to vector<512xf32>
    %11 = vector.shape_cast %10 : vector<512xf32> to vector<1x512xf32>
    %12 = math.log %11 : vector<1x512xf32>
    %13 = arith.addf %12, %6 : vector<1x512xf32>
    %14 = tpu.iota {dimensions = array<i32: 0>} : vector<16x512xi32>
    %15 = vector.broadcast %4 : vector<1x512xi32> to vector<16x512xi32>
    %16 = arith.cmpi eq, %14, %15 : vector<16x512xi32>
    %cst_5 = arith.constant 0.000000e+00 : f32
    %17 = vector.broadcast %cst_5 : f32 to vector<16x512xf32>
    %18 = arith.select %16, %3, %17 : vector<16x512xi1>, vector<16x512xf32>
    %cst_6 = arith.constant dense<0.000000e+00> : vector<512xf32>
    %19 = vector.multi_reduction <add>, %18, %cst_6 [0] : vector<16x512xf32> to vector<512xf32>
    %20 = vector.shape_cast %19 : vector<512xf32> to vector<1x512xf32>
    %21 = tpu.iota {dimensions = array<i32: 1>} : vector<1x512xi32>
    %c1_i32 = arith.constant 1 : i32
    %22 = arith.muli %arg0, %c1_i32 : i32
    %23 = arith.addi %22, %arg1 : i32
    %c512_i32 = arith.constant 512 : i32
    %24 = arith.muli %23, %c512_i32 : i32
    %25 = vector.broadcast %24 : i32 to vector<1x512xi32>
    %26 = arith.addi %21, %25 : vector<1x512xi32>
    %c0_7 = arith.constant 0 : index
    %c0_8 = arith.constant 0 : index
    %27 = vector.load %arg5[%c0_7, %c0_8] : memref<1x512xf32, #tpu.memory_space<vmem>>, vector<1x512xf32>
    %c500_i32 = arith.constant 500 : i32
    %28 = vector.broadcast %c500_i32 : i32 to vector<1x512xi32>
    %29 = arith.cmpi slt, %26, %28 : vector<1x512xi32>
    %30 = arith.subf %13, %20 : vector<1x512xf32>
    %cst_9 = arith.constant 0.000000e+00 : f32
    %31 = vector.broadcast %cst_9 : f32 to vector<1x512xf32>
    %32 = arith.select %29, %30, %31 : vector<1x512xi1>, vector<1x512xf32>
    %33 = arith.addf %27, %32 : vector<1x512xf32>
    %c0_10 = arith.constant 0 : index
    %c0_11 = arith.constant 0 : index
    %34 = vector.load %arg5[%c0_10, %c0_11] : memref<1x512xf32, #tpu.memory_space<vmem>>, vector<1x512xf32>
    tpu.vector_store %arg5[%c0_10, %c0_11], %33 {strides = array<i32>} : memref<1x512xf32, #tpu.memory_space<vmem>>, vector<1x512xf32>,
    %c0_i32_12 = arith.constant 0 : i32
    %35 = arith.cmpi eq, %arg1, %c0_i32_12 : i32
    %36 = arith.extui %35 : i1 to i32
    %c0_i32_13 = arith.constant 0 : i32
    %37 = arith.cmpi ne, %36, %c0_i32_13 : i32
    scf.if %37 {
      %c0_14 = arith.constant 0 : index
      %c0_15 = arith.constant 0 : index
      %38 = vector.load %arg5[%c0_14, %c0_15] : memref<1x512xf32, #tpu.memory_space<vmem>>, vector<1x512xf32>
      %39 = vector.shape_cast %38 : vector<1x512xf32> to vector<1x1x512xf32>
      %cst_16 = arith.constant dense<0.000000e+00> : vector<1xf32>
      %40 = vector.multi_reduction <add>, %39, %cst_16 [1, 2] : vector<1x1x512xf32> to vector<1xf32>
      %41 = vector.shape_cast %40 : vector<1xf32> to vector<1x1x1xf32>
      %42 = vector.extract %41[0, 0, 0] : f32 from vector<1x1x1xf32>
      %43 = vector.broadcast %42 : f32 to vector<8x128xf32>
      %c0_17 = arith.constant 0 : index
      %c0_18 = arith.constant 0 : index
      %44 = vector.load %arg4[%c0_17, %c0_18] : memref<8x128xf32, #tpu.memory_space<vmem>>, vector<8x128xf32>
      tpu.vector_store %arg4[%c0_17, %c0_18], %43 {strides = array<i32>} : memref<8x128xf32, #tpu.memory_space<vmem>>, vector<8x128xf32>,
    } else {
    }
    return
  }
  func.func @transform_0(%arg0: i32, %arg1: i32) -> (i32, i32) {
    %c1_i32 = arith.constant 1 : i32
    %0 = arith.muli %arg0, %c1_i32 : i32
    %1 = arith.addi %0, %arg1 : i32
    %c0_i32 = arith.constant 0 : i32
    %2 = arith.minsi %1, %c0_i32 : i32
    %c0_i32_0 = arith.constant 0 : i32
    %c0_i32_1 = arith.constant 0 : i32
    return %c0_i32_0, %2 : i32, i32
  }
  func.func @transform_1(%arg0: i32, %arg1: i32) -> (i32, i32) {
    %c1_i32 = arith.constant 1 : i32
    %0 = arith.muli %arg0, %c1_i32 : i32
    %1 = arith.addi %0, %arg1 : i32
    %c0_i32 = arith.constant 0 : i32
    %2 = arith.minsi %1, %c0_i32 : i32
    %c0_i32_0 = arith.constant 0 : i32
    %c0_i32_1 = arith.constant 0 : i32
    return %c0_i32_0, %2 : i32, i32
  }
  func.func @transform_2(%arg0: i32, %arg1: i32) -> (i32, i32) {
    %c0_i32 = arith.constant 0 : i32
    %c0_i32_0 = arith.constant 0 : i32
    return %arg0, %c0_i32 : i32, i32
  }
}

</mosaic_0001>

<bundles_post_ra>
// kernel: tpu_custom_call.1
= control target key start
LH: loop header
LB: loop body
LE: loop exit
PB: predicated region body
PF: predicated region fallthrough
CT: control target
= control target key end

     0   :  { %7 = vsyncpa [#allocation4], 0  ;;  %s584_s0 = inlined_call_operand.hbm [shape: f32[16,500], index: 0, kind: input, shape index: {}]   ;;  %s585_s1 = inlined_call_operand.hbm [shape: s32[1,500], index: 1, kind: input, shape index: {}]   ;;  %s586_s2 = inlined_call_operand.hbm [shape: f32[8,128], index: 2, kind: output, shape index: {}]  }
   0x1   :  { %8 = vsyncpa [#allocation7], 0 }
   0x2   :  { %9 = vsyncpa [#allocation5], 0  ;;  %s20_s11 = sshll.u32 %s584_s0, 4  ;;  %s430_s12 = smov [#allocation3]   ;;  %s21_s11 = int_to_ptr.hbm [resolvable:$true] %s20_s11 }
   0x3   :  { %s22_s13 = sshll.u32 %s430_s12, 4  ;;  %s39_s16 = sshll.u32 %s585_s1, 4  ;;  %s23_s13 = int_to_ptr.vmem [resolvable:$true] %s22_s13  ;;  %s40_s16 = int_to_ptr.hbm [resolvable:$true] %s39_s16 }
   0x4   :  { %s431_s17 = smov 512   ;;  %s432_s18 = smov 32  }
   0x5   :  { %28 = dma.hbm_to_vmem [thread:$0]  %s21_s11, 1024, %s23_s13, [#allocation4], %s431_s17, %s431_s17, %s432_s18  }
   0x6   :  { %s433_s19 = smov [#allocation6]  }
   0x7   :  { %s41_s20 = sshll.u32 %s433_s19, 4  ;;  %s42_s20 = int_to_ptr.vmem [resolvable:$true] %s41_s20 }
   0x8   :  { %44 = dma.hbm_to_vmem [thread:$0]  %s40_s16, 64, %s42_s20, [#allocation7]  }
   0x9   :  { %424 = dma.done.wait [#allocation4], 1024  }
   0xa   :  { %425 = vsyncadd [#allocation4], 4294966272 }
   0xb   :  { %426 = dma.done.wait [#allocation7], 64  }
   0xc   :  { %427 = vsyncadd [#allocation7], 4294967232  ;;  %v65_v0 = vlaneseq  ;;  %v434_v2 = vmov 0.0   ;;  %v464_v3 = vld [vmem:[#allocation3] sm:$0xff]  ;;  %v466_v4 = vld [vmem:[#allocation3 + $0x8] sm:$0xff]  ;;  %vm254_vm10 = vcmask 1040384  }
   0xd   :  { %v468_v5 = vld [vmem:[#allocation3 + $0x10] sm:$0xff]  ;;  %v470_v6 = vld [vmem:[#allocation3 + $0x18] sm:$0xff]  ;;  %v472_v7 = vld [vmem:[#allocation3 + $0x20] sm:$0xff]  ;;  %vm256_vm11 = vcmask 1042434   ;;  %vm258_vm12 = vcmask 1041408   ;;  %s435_s0 = smov [#allocation8]  }
   0xe   :  { %vm458_vm0 = vcmp.lt.s32.totalorder %v65_v0, 512  ;;  %v474_v8 = vld [vmem:[#allocation3 + $0x28] sm:$0xff]  ;;  %v476_v9 = vld [vmem:[#allocation3 + $0x30] sm:$0xff]  ;;  %v478_v10 = vld [vmem:[#allocation3 + $0x38] sm:$0xff]  ;;  %v79_v11 = vmax.f32 %v464_v3, %v472_v7  ;;  %v172_v35 = vshrl.u32 %v65_v0, 7  ;;  %s303_s1 = sshll.u32 %s435_s0, 4  ;;  %s304_s1 = int_to_ptr.vmem [resolvable:$true] %s303_s1 }
   0xf   :  { %69 = vst.msk [vmem:[#allocation2] sm:$0xf] %vm458_vm0, %v434_v2  ;;  %v86_v12 = vmax.f32 %v466_v4, %v474_v8  ;;  %v93_v13 = vmax.f32 %v468_v5, %v476_v9  ;;  %v100_v14 = vmax.f32 %v470_v6, %v478_v10  ;;  %v78_v38 = vld [vmem:[#allocation6] sm:$0xf]  ;;  %s305_s23 = sshll.u32 %s586_s2, 4  ;;  %s306_s23 = int_to_ptr.hbm [resolvable:$true] %s305_s23 }
  0x10   :  { %v80_v15 = vrot.slane %v79_v11, 4  ;;  %v173_v47 = vadd.s32 8, %v172_v35  ;;  %v175_v51 = vperm.slane %v78_v38, 1  ;;  %v174_v55 = vperm.slane %v78_v38, 0 }
  0x11   :  { %v87_v16 = vrot.slane %v86_v12, 4  ;;  %v94_v17 = vrot.slane %v93_v13, 4  ;;  %v101_v18 = vrot.slane %v100_v14, 4  ;;  %v176_v57 = vperm.slane %v78_v38, 2 }
  0x12   :  { %v81_v19 = vmax.f32 %v79_v11, %v80_v15  ;;  %v177_v59 = vperm.slane %v78_v38, 3  ;;  %vm513_vm1 = vcmp.eq.s32.totalorder %v172_v35, %v175_v51  ;;  %vm517_vm2 = vcmp.eq.s32.totalorder %v172_v35, %v174_v55 }
  0x13   :  { %v88_v20 = vmax.f32 %v86_v12, %v87_v16  ;;  %v95_v21 = vmax.f32 %v93_v13, %v94_v17  ;;  %v102_v22 = vmax.f32 %v100_v14, %v101_v18  ;;  %vm521_vm3 = vcmp.eq.s32.totalorder %v173_v47, %v175_v51 }
  0x14   :  { %v82_v23 = vrot.slane %v81_v19, 2  ;;  %vm525_vm4 = vcmp.eq.s32.totalorder %v172_v35, %v176_v57  ;;  %vm529_vm5 = vcmp.eq.s32.totalorder %v173_v47, %v174_v55  ;;  %vm533_vm6 = vcmp.eq.s32.totalorder %v173_v47, %v176_v57 }
  0x15   :  { %v89_v24 = vrot.slane %v88_v20, 2  ;;  %v96_v25 = vrot.slane %v95_v21, 2  ;;  %v103_v26 = vrot.slane %v102_v22, 2  ;;  %vm537_vm7 = vcmp.eq.s32.totalorder %v172_v35, %v177_v59 }
  0x16   :  { %v83_v27 = vmax.f32 %v81_v19, %v82_v23  ;;  %vm541_vm8 = vcmp.eq.s32.totalorder %v173_v47, %v177_v59  ;;  %v186_v17 = vsel %vm517_vm2, %v464_v3, 0.0  ;;  %v187_v18 = vsel %vm513_vm1, %v466_v4, 0.0 }
  0x17   :  { %v90_v28 = vmax.f32 %v88_v20, %v89_v24  ;;  %v97_v29 = vmax.f32 %v95_v21, %v96_v25  ;;  %v104_v30 = vmax.f32 %v102_v22, %v103_v26  ;;  %v191_v19 = vsel %vm521_vm3, %v474_v8, 0.0 }
  0x18   :  { %v84_v31 = vrot.slane %v83_v27, 1  ;;  %v188_v21 = vsel %vm525_vm4, %v468_v5, 0.0  ;;  %v190_v22 = vsel %vm529_vm5, %v472_v7, 0.0  ;;  %v201_v25 = vadd.f32 %v191_v19, %v187_v18 }
  0x19   :  { %v91_v32 = vrot.slane %v90_v28, 1  ;;  %v98_v33 = vrot.slane %v97_v29, 1  ;;  %v105_v34 = vrot.slane %v104_v30, 1  ;;  %v194_v26 = vadd.f32 %v190_v22, %v186_v17 }
  0x1a   :  { %v489_v36 = vmax.f32 %v83_v27, %v84_v31 }
  0x1b   :  { %v491_v37 = vmax.f32 %v90_v28, %v91_v32  ;;  %v493_v39 = vmax.f32 %v97_v29, %v98_v33  ;;  %v495_v40 = vmax.f32 %v104_v30, %v105_v34  ;;  %v202_v34 = vrot.slane %v201_v25, 4 }
  0x1c   :  { %v107_v41 = vsub.f32 %v464_v3, %v489_v36  ;;  %v111_v43 = vsub.f32 %v472_v7, %v489_v36  ;;  %v192_v3 = vsel %vm533_vm6, %v476_v9, 0.0  ;;  %v195_v38 = vrot.slane %v194_v26, 4 }
  0x1d   :  { %v108_v42 = vsub.f32 %v466_v4, %v491_v37  ;;  %v109_v44 = vsub.f32 %v468_v5, %v493_v39  ;;  %v110_v45 = vsub.f32 %v470_v6, %v495_v40  ;;  %v112_v46 = vsub.f32 %v474_v8, %v491_v37 }
  0x1e   :  { %v113_v48 = vsub.f32 %v476_v9, %v493_v39  ;;  %v115_v49 = vmul.f32 1.442695, %v107_v41  ;;  %v114_v52 = vsub.f32 %v478_v10, %v495_v40  ;;  %v123_v56 = vmul.f32 1.442695, %v111_v43 }
  0x1f   :  { %v117_v50 = vmul.f32 1.442695, %v108_v42  ;;  %v119_v53 = vmul.f32 1.442695, %v109_v44  ;;  %v121_v54 = vmul.f32 1.442695, %v110_v45  ;;  %v208_v27 = vadd.f32 %v192_v3, %v188_v21 }
  0x20   :  { %328 = vpow2.f32 %v115_v49  ;;  %v125_v58 = vmul.f32 1.442695, %v112_v46  ;;  %v127_v60 = vmul.f32 1.442695, %v113_v48  ;;  %v129_v62 = vmul.f32 1.442695, %v114_v52 }
  0x21   :  { %330 = vpow2.f32 %v117_v50  ;;  %v189_v4 = vsel %vm537_vm7, %v470_v6, 0.0  ;;  %v193_v8 = vsel %vm541_vm8, %v478_v10, 0.0  ;;  %v209_v41 = vrot.slane %v208_v27, 4 }
  0x22   :  { %332 = vpow2.f32 %v119_v53  ;;  %v215_v29 = vadd.f32 %v193_v8, %v189_v4  ;;  %v203_v48 = vadd.f32 %v202_v34, %v201_v25  ;;  %v196_v51 = vadd.f32 %v195_v38, %v194_v26 }
  0x23   :  { %334 = vpow2.f32 %v121_v54  ;;  %v210_v52 = vadd.f32 %v209_v41, %v208_v27  ;;  %v223_v3 = vand.u32 127, %v65_v0 }
  0x24   :  { %336 = vpow2.f32 %v123_v56  ;;  %v216_v43 = vrot.slane %v215_v29, 4  ;;  %v197_v63 = vrot.slane %v196_v51, 2 }
  0x25   :  { %338 = vpow2.f32 %v125_v58  ;;  %v211_v2 = vrot.slane %v210_v52, 2 }
  0x26   :  { %v329_v16 = vpop.eup %328  ;;  %340 = vpow2.f32 %v127_v60  ;;  %v217_v55 = vadd.f32 %v216_v43, %v215_v29  ;;  %v204_v60 = vrot.slane %v203_v48, 2  ;;  %v198_v19 = vadd.f32 %v197_v63, %v196_v51 }
  0x27   :  { %v331_v20 = vpop.eup %330  ;;  %342 = vpow2.f32 %v129_v62 }
  0x28   :  { %v333_v23 = vpop.eup %332  ;;  %v218_v13 = vrot.slane %v217_v55, 2  ;;  %v205_v17 = vadd.f32 %v204_v60, %v203_v48 }
  0x29   :  { %v335_v24 = vpop.eup %334 }
  0x2a   :  { %v337_v5 = vpop.eup %336  ;;  %v219_v21 = vadd.f32 %v218_v13, %v217_v55  ;;  %v206_v22 = vrot.slane %v205_v17, 1 }
  0x2b   :  { %v339_v28 = vpop.eup %338  ;;  %v131_v7 = vadd.f32 %v337_v5, %v329_v16 }
  0x2c   :  { %v341_v30 = vpop.eup %340  ;;  %v138_v31 = vadd.f32 %v339_v28, %v331_v20  ;;  %v212_v20 = vadd.f32 %v211_v2, %v210_v52  ;;  %v207_v28 = vadd.f32 %v206_v22, %v205_v17 }
  0x2d   :  { %v343_v9 = vpop.eup %342  ;;  %v132_v32 = vrot.slane %v131_v7, 4  ;;  %v145_v33 = vadd.f32 %v341_v30, %v333_v23  ;;  %v199_v23 = vrot.slane %v198_v19, 1 }
  0x2e   :  { %v139_v35 = vrot.slane %v138_v31, 4  ;;  %v152_v6 = vadd.f32 %v343_v9, %v335_v24  ;;  %v213_v4 = vrot.slane %v212_v20, 1  ;;  %v220_v24 = vrot.slane %v219_v21, 1 }
  0x2f   :  { %v133_v42 = vadd.f32 %v132_v32, %v131_v7  ;;  %v146_v10 = vrot.slane %v145_v33, 4  ;;  %v226_v7 = vadd.s32 384, %v223_v3  ;;  %v200_v9 = vadd.f32 %v199_v23, %v198_v19 }
  0x30   :  { %v140_v44 = vadd.f32 %v139_v35, %v138_v31  ;;  %v153_v45 = vrot.slane %v152_v6, 4  ;;  %v214_v32 = vadd.f32 %v213_v4, %v212_v20  ;;  %v221_v0 = vadd.f32 %v220_v24, %v219_v21 }
  0x31   :  { %v134_v46 = vrot.slane %v133_v42, 2  ;;  %v147_v47 = vadd.f32 %v146_v10, %v145_v33  ;;  %vm238_vm9 = vcmp.lt.s32.totalorder %v226_v7, 500 }
  0x32   :  { %v141_v49 = vrot.slane %v140_v44, 2  ;;  %v154_v50 = vadd.f32 %v153_v45, %v152_v6 }
  0x33   :  { %v135_v53 = vadd.f32 %v134_v46, %v133_v42  ;;  %v148_v54 = vrot.slane %v147_v47, 2 }
  0x34   :  { %v142_v56 = vadd.f32 %v141_v49, %v140_v44  ;;  %v155_v57 = vrot.slane %v154_v50, 2 }
  0x35   :  { %v136_v58 = vrot.slane %v135_v53, 1  ;;  %v149_v59 = vadd.f32 %v148_v54, %v147_v47 }
  0x36   :  { %v143_v61 = vrot.slane %v142_v56, 1  ;;  %v156_v62 = vadd.f32 %v155_v57, %v154_v50 }
  0x37   :  { %v137_v11 = vadd.f32 %v136_v58, %v135_v53  ;;  %v150_v12 = vrot.slane %v149_v59, 1 }
  0x38   :  { %v144_v14 = vadd.f32 %v143_v61, %v142_v56  ;;  %v157_v15 = vrot.slane %v156_v62, 1 }
  0x39   :  { %v151_v16 = vadd.f32 %v150_v12, %v149_v59  ;;  %344 = vlog2.f32 %v137_v11 }
  0x3a   :  { %v158_v18 = vadd.f32 %v157_v15, %v156_v62  ;;  %346 = vlog2.f32 %v144_v14 }
  0x3b   :  { %348 = vlog2.f32 %v151_v16 }
  0x3c   :  { %350 = vlog2.f32 %v158_v18 }
  0x3f   :  { %v345_v8 = vpop.eup %344 }
  0x40   :  { %v347_v25 = vpop.eup %346  ;;  %v160_v5 = vmul.f32 0.6931472, %v345_v8 }
  0x41   :  { %v349_v26 = vpop.eup %348  ;;  %v162_v27 = vmul.f32 0.6931472, %v347_v25 }
  0x42   :  { %v351_v29 = vpop.eup %350  ;;  %v164_v30 = vmul.f32 0.6931472, %v349_v26  ;;  %v167_v31 = vadd.f32 %v160_v5, %v489_v36 }
  0x43   :  { %v166_v33 = vmul.f32 0.6931472, %v351_v29  ;;  %v168_v34 = vadd.f32 %v162_v27, %v491_v37  ;;  %v234_v37 = vld [vmem:[#allocation2] sm:$0xf] }
  0x44   :  { %v169_v35 = vadd.f32 %v164_v30, %v493_v39  ;;  %v239_v41 = vsub.f32 %v167_v31, %v200_v9 }
  0x45   :  { %v170_v6 = vadd.f32 %v166_v33, %v495_v40  ;;  %v240_v38 = vsub.f32 %v168_v34, %v207_v28 }
  0x46   :  { %v241_v42 = vsub.f32 %v169_v35, %v214_v32 }
  0x47   :  { %v242_v10 = vsub.f32 %v170_v6, %v221_v0  ;;  %v251_v43 = vrot.slane %v240_v38, 7 }
  0x48   :  { %v252_v44 = vrot.slane %v241_v42, 6 }
  0x49   :  { %v246_v45 = vsel %vm238_vm9, %v242_v10, 0.0  ;;  %v255_v46 = vsel %vm254_vm10, %v239_v41, %v251_v43 }
  0x4a   :  { %v253_v36 = vrot.slane %v246_v45, 5 }
  0x4c   :  { %v257_v47 = vsel %vm256_vm11, %v252_v44, %v253_v36 }
  0x4d   :  { %v259_v48 = vsel %vm258_vm12, %v255_v46, %v257_v47 }
  0x4e   :  { %v261_v39 = vadd.f32 %v259_v48, %v234_v37 }
  0x50   :  { %266 = vst.msk [vmem:[#allocation2] sm:$0xf] %vm458_vm0, %v261_v39 }
  0x57   :  { %v270_v40 = vld [vmem:[#allocation2] sm:$0xf] }
  0x58   :  { %v272_v49 = vperm.slane %v270_v40, 0  ;;  %v273_v50 = vperm.slane %v270_v40, 1  ;;  %v274_v51 = vperm.slane %v270_v40, 2  ;;  %v275_v52 = vperm.slane %v270_v40, 3 }
  0x5a   :  { %v280_v53 = vsel %vm254_vm10, %v272_v49, 0.0  ;;  %v281_v54 = vsel %vm254_vm10, %v273_v50, 0.0  ;;  %v283_v55 = vsel %vm254_vm10, %v274_v51, 0.0  ;;  %v285_v57 = vsel %vm254_vm10, %v275_v52, 0.0 }
  0x5b   :  { %v282_v56 = vadd.f32 %v281_v54, %v280_v53 }
  0x5d   :  { %v284_v58 = vadd.f32 %v283_v55, %v282_v56 }
  0x5f   :  { %v286_v59 = vadd.f32 %v285_v57, %v284_v58 }
  0x61   :  { %287 = vadd.xlane.f32.xlu0 %v286_v59 }
  0xd4   :  { %v288_v60 = vpop.xlane.xlu0 %287 }
  0xd5   :  { %v289_v1 = vrot.slane %v288_v60, 4 }
  0xd7   :  { %v290_v61 = vadd.f32 %v289_v1, %v288_v60 }
  0xd9   :  { %v291_v62 = vrot.slane %v290_v61, 2 }
  0xdb   :  { %v292_v63 = vadd.f32 %v291_v62, %v290_v61 }
  0xdd   :  { %v293_v2 = vrot.slane %v292_v63, 1 }
  0xdf   :  { %v294_v11 = vadd.f32 %v293_v2, %v292_v63 }
  0xe1   :  { %320 = vpush %v294_v11 }
 0x112   :  { %s321_s24 = spop %320 }
 0x113   :  { %v296_v12 = vstv %s321_s24 }
 0x114   :  { %297 = vst [vmem:[#allocation8] sm:$0xff] %v296_v12 }
 0x115   :  { %308 = dma.vmem_to_hbm [thread:$0]  %s304_s1, 128, %s306_s23, [#allocation5]  }
 0x116   :  { %428 = dma.done.wait [#allocation5], 128  }
 0x117   :  { %429 = vsyncadd [#allocation5], 4294967168 }
 0x118   :  { %313 = vsyncpa [#allocation4], 1 }
 0x119   :  { %314 = vsyncpa [#allocation7], 1 }
 0x11a   :  { %315 = vsyncpa [#allocation5], 1 }

</bundles_post_ra>
